<compile_context>
chip_gen: v7x
topology: tpu7x:2x2x1
jax: 0.10.0
libtpu: 0.0.40
codegen_flags: <defaults>
</compile_context>

<pallas_src>
import math

import jax
import jax.numpy as jnp
import numpy as np
from jax.experimental import pallas as pl
from jax.experimental.pallas import tpu as pltpu


def _round_up(x, m):
    return ((x + m - 1) // m) * m


# ------------------------------------------------------------------ kernels

def _ffn_kernel_acc_in_out(x_ref, w1_ref, b1_ref, w2_ref, b2_ref, o_ref):
    """f32 output: accumulate the 2nd matmul directly into o_ref.

    o_ref uses the same block index for every k, so it stays resident in VMEM
    across the reduction axis -> no separate accumulator scratch needed.
    """
    k = pl.program_id(1)

    h = jnp.dot(x_ref[...], w1_ref[...], preferred_element_type=jnp.float32)
    h = jnp.maximum(h + b1_ref[...], 0.0).astype(w2_ref.dtype)
    contrib = jnp.dot(h, w2_ref[...], preferred_element_type=jnp.float32)

    @pl.when(k == 0)
    def _():
        o_ref[...] = contrib + b2_ref[...]

    @pl.when(k > 0)
    def _():
        o_ref[...] += contrib


def _ffn_kernel_scratch(x_ref, w1_ref, b1_ref, w2_ref, b2_ref, o_ref, acc_ref):
    """Low-precision output: f32 VMEM accumulator, cast once at the last k."""
    k = pl.program_id(1)

    @pl.when(k == 0)
    def _():
        acc_ref[...] = jnp.zeros_like(acc_ref)

    h = jnp.dot(x_ref[...], w1_ref[...], preferred_element_type=jnp.float32)
    h = jnp.maximum(h + b1_ref[...], 0.0).astype(w2_ref.dtype)
    acc_ref[...] += jnp.dot(h, w2_ref[...], preferred_element_type=jnp.float32)

    @pl.when(k == pl.num_programs(1) - 1)
    def _():
        o_ref[...] = (acc_ref[...] + b2_ref[...]).astype(o_ref.dtype)


# ------------------------------------------------------------------ tiling

def _vmem_footprint(tm, tf, D, x_bytes, w_bytes, out_bytes, acc_bytes):
    """Approximate per-step VMEM bytes (inputs/outputs double-buffered)."""
    return (2 * tm * D * x_bytes                 # x tile
            + 2 * (D * tf + tf * D) * w_bytes    # W1 + W2 tiles
            + 2 * (tf + D) * 4                   # biases (f32)
            + 2 * tm * D * out_bytes             # output tile
            + tm * D * acc_bytes                 # f32 accumulator scratch
            + tm * tf * 4)                       # hidden tile (f32)


def _pick_tiles(M, D, Dff, x_bytes, w_bytes, out_bytes, acc_bytes, budget):
    # Hidden tile: collapse the reduction axis entirely for small d_ff (single
    # pass, no accumulator RMW); else 512 to feed v6e/v7x's 256x256 MXUs.
    tf = _round_up(Dff, 128) if Dff <= 1024 else 512
    # Row tile: as large as possible for W1/W2 reuse, but keep >= 2 row tiles
    # whenever M allows (megacore on v7x).
    if M >= 1024:
        tm = 512
    elif M > 8:
        tm = max(8, _round_up(pl.cdiv(M, 2), 8))
    else:
        tm = 8
    # Shrink to the per-chip VMEM budget (v7x only has 64 MiB physical).
    while _vmem_footprint(tm, tf, D, x_bytes, w_bytes, out_bytes,
                          acc_bytes) > budget:
        if tm >= tf and tm > 64:
            tm = max(64, _round_up(tm // 2, 8))
        elif tf > 128:
            tf = max(128, _round_up(tf // 2, 128))
        elif tm > 64:
            tm = max(64, _round_up(tm // 2, 8))
        else:
            break
    return tm, tf


# ------------------------------------------------------------------ wrapper

def poswise_ffn(x, w1, b1, w2, b2, *, compute_dtype=jnp.bfloat16,
                tm=None, tf=None):
    """Fused position-wise FFN: relu(x @ w1 + b1) @ w2 + b2.

    x : (B, T, d_model)   w1 : (d_model, d_ff)   b1 : (d_ff,)
    w2 : (d_ff, d_model)  b2 : (d_model,)
    compute_dtype : dtype fed to the MXU (bf16 default; accumulation is f32).
    """
    B, T, D = x.shape
    Dff = w1.shape[1]
    M = B * T
    out_dtype = x.dtype

    x_bytes = jnp.dtype(compute_dtype).itemsize
    w_bytes = jnp.dtype(compute_dtype).itemsize
    out_bytes = jnp.dtype(out_dtype).itemsize
    acc_in_out = (out_dtype == jnp.float32)
    acc_bytes = 0 if acc_in_out else 4

    # Per-chip VMEM budget (64 MiB on v7x, 128 MiB on v5e/v6e).
    try:
        vmem_cap = int(getattr(pltpu.get_tpu_info(), "vmem_capacity_bytes",
                               64 * 1024 * 1024))
    except Exception:
        vmem_cap = 64 * 1024 * 1024
    budget = int(0.70 * vmem_cap)

    tm_auto, tf_auto = _pick_tiles(M, D, Dff, x_bytes, w_bytes, out_bytes,
                                   acc_bytes, budget)
    tm = tm_auto if tm is None else tm
    tf = tf_auto if tf is None else tf

    # Cast MXU operands once at the boundary; biases stay f32 (added to the
    # f32 accumulator).
    x2 = x.reshape(M, D).astype(compute_dtype)
    w1c = w1.astype(compute_dtype)
    w2c = w2.astype(compute_dtype)
    b1f = b1.astype(jnp.float32)
    b2f = b2.astype(jnp.float32)

    # Pad rows to a tile multiple (padded rows are sliced off afterwards).
    Mp = pl.cdiv(M, tm) * tm
    if Mp != M:
        x2 = jnp.pad(x2, ((0, Mp - M), (0, 0)))

    # Pad the hidden (reduction) dim: zero-padded W1 cols give relu(0 + 0) = 0,
    # which contributes nothing through the zero-padded W2 rows -> exact.
    Fp = pl.cdiv(Dff, tf) * tf
    if Fp != Dff:
        w1c = jnp.pad(w1c, ((0, 0), (0, Fp - Dff)))
        b1f = jnp.pad(b1f, ((0, Fp - Dff),))
        w2c = jnp.pad(w2c, ((0, Fp - Dff), (0, 0)))

    grid = (Mp // tm, Fp // tf)
    n_i = grid[0]

    flops = 4 * Mp * D * Fp                        # two matmuls, 2*M*D*F each
    bytes_accessed = (Mp * D * x_bytes             # x read
                      + Mp * D * out_bytes         # out write
                      + n_i * 2 * D * Fp * w_bytes # W1+W2 re-streamed per row tile
                      + n_i * (Fp + D) * 4)        # biases

    footprint = _vmem_footprint(tm, tf, D, x_bytes, w_bytes, out_bytes,
                                acc_bytes)
    vmem_limit = int(min(0.85 * vmem_cap,
                         max(32 * 1024 * 1024, 2 * footprint)))

    kernel = _ffn_kernel_acc_in_out if acc_in_out else _ffn_kernel_scratch
    scratch = () if acc_in_out else (pltpu.VMEM((tm, D), jnp.float32),)

    out = pl.pallas_call(
        kernel,
        out_shape=jax.ShapeDtypeStruct((Mp, D), out_dtype),
        grid=grid,
        in_specs=[
            pl.BlockSpec((tm, D), lambda i, k: (i, 0)),   # x rows (reused over k)
            pl.BlockSpec((D, tf), lambda i, k: (0, k)),   # W1 cols
            pl.BlockSpec((1, tf), lambda i, k: (0, k)),   # b1 slice
            pl.BlockSpec((tf, D), lambda i, k: (k, 0)),   # W2 rows
            pl.BlockSpec((1, D), lambda i, k: (0, 0)),    # b2
        ],
        out_specs=pl.BlockSpec((tm, D), lambda i, k: (i, 0)),  # resident over k
        scratch_shapes=scratch,
        compiler_params=pltpu.CompilerParams(
            dimension_semantics=("parallel", "arbitrary"),
            vmem_limit_bytes=vmem_limit,
        ),
        cost_estimate=pl.CostEstimate(
            flops=flops, transcendentals=0, bytes_accessed=bytes_accessed),
    )(x2, w1c, b1f.reshape(1, Fp), w2c, b2f.reshape(1, D))

    return out[:M].reshape(B, T, D)


# ------------------------------------------------------------------ main

if __name__ == "__main__":
    # Small but lane-dense shapes (feature dims are multiples of 128 so every
    # block's last dim stores with full, unmasked vregs).
    B, T, d_model, d_ff = 2, 64, 128, 256

    key = jax.random.PRNGKey(0)
    kx, kw1, kb1, kw2, kb2 = jax.random.split(key, 5)
    s1 = 1.0 / math.sqrt(d_model)
    s2 = 1.0 / math.sqrt(d_ff)

    x = jax.random.normal(kx, (B, T, d_model), jnp.float32)
    w1 = jax.random.uniform(kw1, (d_model, d_ff), jnp.float32, -s1, s1)
    b1 = jax.random.uniform(kb1, (d_ff,), jnp.float32, -s1, s1)
    w2 = jax.random.uniform(kw2, (d_ff, d_model), jnp.float32, -s2, s2)
    b2 = jax.random.uniform(kb2, (d_model,), jnp.float32, -s2, s2)

    # Pure-JAX reference (same math as the PyTorch module's forward).
    ref = (jnp.maximum(x.reshape(-1, d_model) @ w1 + b1, 0.0) @ w2 + b2)
    ref = np.asarray(ref).reshape(B, T, d_model)

    # Exact-precision path (f32 MXU operands) -> tight tolerance.
    out_f32 = poswise_ffn(x, w1, b1, w2, b2, compute_dtype=jnp.float32)
    jax.block_until_ready(out_f32)
    np.testing.assert_allclose(np.asarray(out_f32), ref, rtol=1e-5, atol=1e-5)

    # Default fast path: bf16 MXU operands with f32 accumulation -> loosened
    # tolerance vs. the f32 reference (documented precision trade-off).
    out = poswise_ffn(x, w1, b1, w2, b2)
    jax.block_until_ready(out)
    np.testing.assert_allclose(np.asarray(out), ref, rtol=3e-2, atol=3e-2)

    assert out.shape == (B, T, d_model)
    print("KERNEL_OK")
</pallas_src>

<mosaic_0001>
module attributes {stable_mosaic.version = 11 : i64} {
  func.func @_ffn_kernel_acc_in_out(%arg0: i32, %arg1: i32, %arg2: memref<64x128xf32, #tpu.memory_space<vmem>>, %arg3: memref<128x256xf32, #tpu.memory_space<vmem>>, %arg4: memref<1x256xf32, #tpu.memory_space<vmem>>, %arg5: memref<256x128xf32, #tpu.memory_space<vmem>>, %arg6: memref<1x128xf32, #tpu.memory_space<vmem>>, %arg7: memref<64x128xf32, #tpu.memory_space<vmem>>) attributes {dimension_semantics = [#tpu.dimension_semantics<parallel>, #tpu.dimension_semantics<arbitrary>], iteration_bounds = array<i64: 2, 1>, scalar_prefetch = 0 : i64, scratch_operands = 0 : i64, tpu.core_type = #tpu.core_type<tc>, window_params = [{transform_indices = @transform_0, window_bounds = array<i64: 64, 128>}, {transform_indices = @transform_1, window_bounds = array<i64: 128, 256>}, {transform_indices = @transform_2, window_bounds = array<i64: 1, 256>}, {transform_indices = @transform_3, window_bounds = array<i64: 256, 128>}, {pipeline_mode = #tpu.pipeline_mode<synchronous>, transform_indices = @transform_4, window_bounds = array<i64: 1, 128>}, {transform_indices = @transform_5, window_bounds = array<i64: 64, 128>}]} {
    %c0 = arith.constant 0 : index
    %c0_0 = arith.constant 0 : index
    %0 = vector.load %arg2[%c0, %c0_0] : memref<64x128xf32, #tpu.memory_space<vmem>>, vector<64x128xf32>
    %c0_1 = arith.constant 0 : index
    %c0_2 = arith.constant 0 : index
    %1 = vector.load %arg3[%c0_1, %c0_2] : memref<128x256xf32, #tpu.memory_space<vmem>>, vector<128x256xf32>
    %cst = arith.constant dense<0.000000e+00> : vector<64x256xf32>
    %2 = tpu.matmul %0, %1, %cst {dimension_numbers = #tpu.dot_dimension_numbers<[1], [0], [0], [1], [0, 0, 1, 1], [], []>} : vector<64x128xf32>, vector<128x256xf32>, vector<64x256xf32> -> vector<64x256xf32>
    %c0_3 = arith.constant 0 : index
    %c0_4 = arith.constant 0 : index
    %3 = vector.load %arg4[%c0_3, %c0_4] : memref<1x256xf32, #tpu.memory_space<vmem>>, vector<1x256xf32>
    %4 = vector.broadcast %3 : vector<1x256xf32> to vector<64x256xf32>
    %5 = arith.addf %2, %4 : vector<64x256xf32>
    %cst_5 = arith.constant 0.000000e+00 : f32
    %6 = vector.broadcast %cst_5 : f32 to vector<64x256xf32>
    %7 = arith.maximumf %5, %6 : vector<64x256xf32>
    %c0_6 = arith.constant 0 : index
    %c0_7 = arith.constant 0 : index
    %8 = vector.load %arg5[%c0_6, %c0_7] : memref<256x128xf32, #tpu.memory_space<vmem>>, vector<256x128xf32>
    %cst_8 = arith.constant dense<0.000000e+00> : vector<64x128xf32>
    %9 = tpu.matmul %7, %8, %cst_8 {dimension_numbers = #tpu.dot_dimension_numbers<[1], [0], [0], [1], [0, 0, 1, 1], [], []>} : vector<64x256xf32>, vector<256x128xf32>, vector<64x128xf32> -> vector<64x128xf32>
    %c0_i32 = arith.constant 0 : i32
    %10 = arith.cmpi eq, %arg1, %c0_i32 : i32
    %11 = arith.extui %10 : i1 to i32
    %c0_i32_9 = arith.constant 0 : i32
    %12 = arith.cmpi ne, %11, %c0_i32_9 : i32
    scf.if %12 {
      %c0_12 = arith.constant 0 : index
      %c0_13 = arith.constant 0 : index
      %16 = vector.load %arg6[%c0_12, %c0_13] : memref<1x128xf32, #tpu.memory_space<vmem>>, vector<1x128xf32>
      %17 = vector.broadcast %16 : vector<1x128xf32> to vector<64x128xf32>
      %18 = arith.addf %9, %17 : vector<64x128xf32>
      %c0_14 = arith.constant 0 : index
      %c0_15 = arith.constant 0 : index
      %19 = vector.load %arg7[%c0_14, %c0_15] : memref<64x128xf32, #tpu.memory_space<vmem>>, vector<64x128xf32>
      tpu.vector_store %arg7[%c0_14, %c0_15], %18 {strides = array<i32>} : memref<64x128xf32, #tpu.memory_space<vmem>>, vector<64x128xf32>,
    } else {
    }
    %c0_i32_10 = arith.constant 0 : i32
    %13 = arith.cmpi sgt, %arg1, %c0_i32_10 : i32
    %14 = arith.extui %13 : i1 to i32
    %c0_i32_11 = arith.constant 0 : i32
    %15 = arith.cmpi ne, %14, %c0_i32_11 : i32
    scf.if %15 {
      %c0_12 = arith.constant 0 : index
      %c0_13 = arith.constant 0 : index
      %16 = vector.load %arg7[%c0_12, %c0_13] : memref<64x128xf32, #tpu.memory_space<vmem>>, vector<64x128xf32>
      %17 = arith.addf %16, %9 : vector<64x128xf32>
      %c0_14 = arith.constant 0 : index
      %c0_15 = arith.constant 0 : index
      %18 = vector.load %arg7[%c0_14, %c0_15] : memref<64x128xf32, #tpu.memory_space<vmem>>, vector<64x128xf32>
      tpu.vector_store %arg7[%c0_14, %c0_15], %17 {strides = array<i32>} : memref<64x128xf32, #tpu.memory_space<vmem>>, vector<64x128xf32>,
    } else {
    }
    return
  }
  func.func @transform_0(%arg0: i32, %arg1: i32) -> (i32, i32) {
    %c0_i32 = arith.constant 0 : i32
    %c0_i32_0 = arith.constant 0 : i32
    return %arg0, %c0_i32 : i32, i32
  }
  func.func @transform_1(%arg0: i32, %arg1: i32) -> (i32, i32) {
    %c0_i32 = arith.constant 0 : i32
    %c0_i32_0 = arith.constant 0 : i32
    return %c0_i32, %arg1 : i32, i32
  }
  func.func @transform_2(%arg0: i32, %arg1: i32) -> (i32, i32) {
    %c0_i32 = arith.constant 0 : i32
    %c0_i32_0 = arith.constant 0 : i32
    return %c0_i32, %arg1 : i32, i32
  }
  func.func @transform_3(%arg0: i32, %arg1: i32) -> (i32, i32) {
    %c0_i32 = arith.constant 0 : i32
    %c0_i32_0 = arith.constant 0 : i32
    return %arg1, %c0_i32 : i32, i32
  }
  func.func @transform_4(%arg0: i32, %arg1: i32) -> (i32, i32) {
    %c0_i32 = arith.constant 0 : i32
    %c0_i32_0 = arith.constant 0 : i32
    %c0_i32_1 = arith.constant 0 : i32
    return %c0_i32, %c0_i32_0 : i32, i32
  }
  func.func @transform_5(%arg0: i32, %arg1: i32) -> (i32, i32) {
    %c0_i32 = arith.constant 0 : i32
    %c0_i32_0 = arith.constant 0 : i32
    return %arg0, %c0_i32 : i32, i32
  }
}

</mosaic_0001>

<bundles_post_ra>
// kernel: tpu_custom_call.1
= control target key start
LH: loop header
LB: loop body
LE: loop exit
PB: predicated region body
PF: predicated region fallthrough
CT: control target
= control target key end

     0   :  { %10 = vsyncpa [#allocation3], 0  ;;  %s1574_s0 = inlined_call_operand.hbm [shape: f32[128,128], index: 0, kind: input, shape index: {}]   ;;  %s1575_s1 = inlined_call_operand.hbm [shape: f32[128,256], index: 1, kind: input, shape index: {}]   ;;  %s1576_s2 = inlined_call_operand.vmem [shape: f32[1,256], index: 2, kind: input, shape index: {}]   ;;  %s1577_s3 = inlined_call_operand.hbm [shape: f32[256,128], index: 3, kind: input, shape index: {}]   ;;  %s1578_s4 = inlined_call_operand.vmem [shape: f32[1,128], index: 4, kind: input, shape index: {}]   ;;  %s1579_s5 = inlined_call_operand.hbm [shape: f32[128,128], index: 5, kind: output, shape index: {}]  }
   0x1   :  { %12 = vsyncpa [#allocation3 + $0x1], 0 }
   0x2   :  { %13 = vsyncpa [#allocation6], 0 }
   0x3   :  { %14 = vsyncpa [#allocation4], 0 }
   0x4   :  { %16 = vsyncpa [#allocation4 + $0x1], 0  ;;  %s1274_s18 = smov 0   ;;  %s1276_s19 = smov 0  }
   0x5   :  { %s1278_s20 = smov 0   ;;  %s1280_s21 = smov 0  }
   0x6   :  { %s1282_s22 = smov 0   ;;  %s1284_s23 = smov 0  }
   0x7 LB: > { %s826_s24 = sadd.s32 4294967295, %s1231_s23   ;;  %s827_s25 = sadd.s32 4294967294, %s1231_s23   ;;  %s1231_s23 = sphi %s1284_s23, %s22_s23   ;;  %s1227_s22 = sphi %s1282_s22, %s1603_s22   ;;  %s1223_s21 = sphi %s1280_s21, %s1602_s21   ;;  %s1219_s20 = sphi %s1278_s20, %s1601_s20   ;;  %s1215_s19 = sphi %s1276_s19, %s1600_s19   ;;  %s1211_s18 = sphi %s1274_s18, %s1599_s18  }
   0x8   : > { %p54_p0 = scmp.ne.s32.totalorder %s1215_s19, %s1211_s18  ;;  %p1308_p1 = scmp.eq.s32.totalorder %s826_s24, 0 }
   0x9   : > { %p1312_p2 = scmp.eq.s32.totalorder %s826_s24, 1  ;;  %p183_p3 = scmp.eq.s32.totalorder %s827_s25, 1 }
   0xa   : > { %s1585_s26 = scalar_select %p1308_p1, 1, 0 }
   0xb   : > { %p1318_p4 = por %p1308_p1, %p54_p0  ;;  %p828_p5 = scmp.ge.s32.totalorder %s1231_s23, 1 }
   0xc   : > { %p1323_p6 = por %p183_p3, %p54_p0  ;;  %p190_p7 = scmp.lt.s32.totalorder %s1231_s23, 3 }
   0xd   : > { %s1587_s28 = scalar_select %p1318_p4, 1, 0 }
   0xe   : > { %s1588_s29 = scalar_select %p1323_p6, 1, 0 }
   0xf   : > { %p1328_p8 = pnand %p828_p5, %p190_p7  ;;  %s1233_s6 = smov [#allocation5]  }
  0x10   : > { %s205_s7 = sshll.u32 %s1233_s6, 4  ;;  %s1234_s9 = smov [#allocation7]   ;;  %s1332_s7 = int_to_ptr.vmem [resolvable:$true] %s205_s7 }
  0x11   : > { %p981_p9 = pneg %p1328_p8  ;;  %s229_s10 = sshll.u32 %s1234_s9, 4  ;;  %s1343_s10 = int_to_ptr.vmem [resolvable:$true] %s229_s10 }
  0x12   : > { %s1059_s13 = scalar_lea.hbm %s1575_s1, 4096 }
  0x13   : > { %p1339_p11 = pnand %p981_p9, %p1308_p1  ;;  %p1060_p12 = scmp.ne.s32.totalorder %s1575_s1, %s1059_s13 }
  0x14   : > { %p1066_p5 = scmp.lt.u32.totalorder %s1059_s13, %s1575_s1 }
  0x15   : > { %p1061_p13 = pneg %p1339_p11 }
  0x17   : > { %p1062_p0 = pnand %p1061_p13, %p1060_p12 }
  0x19   : > { %p1063_p3 = pneg %p1062_p0 }
  0x1b   : > { %p1068_p7 = pnand %p1066_p5, %p1063_p3 }
  0x1d   : > { %1071 = shalt.err (!%p1068_p7)
}
  0x1e   : > { %s1072_s24 = scalar_lea.vmem %s1332_s7, 4096  ;;  %p1080_p1 = scmp.lt.s32.totalorder %s1332_s7, %s1332_s7 }
  0x1f   : > { %p1073_p9 = scmp.ne.s32.totalorder %s1332_s7, %s1072_s24  ;;  %p1081_p12 = scmp.lt.s32.totalorder %s1072_s24, %s1072_s24 }
  0x21   : > { %p1075_p10 = pnand %p1073_p9, %p1061_p13  ;;  %p1082_p0 = por %p1081_p12, %p1080_p1 }
  0x23   : > { %p1076_p6 = pneg %p1075_p10 }
  0x25   : > { %p1083_p4 = pnand %p1082_p0, %p1076_p6 }
  0x27   : > { %1086 = shalt.err (!%p1083_p4)
}
  0x28   : > { %s1235_s25 = smov 256   ;;  %s1236_s6 = smov 16  }
  0x29   : > { %984 = dma.hbm_to_vmem [thread:$0]  (!%p1339_p11), %s1575_s1, 4096, %s1332_s7, [#allocation6], %s1235_s25, %s1235_s25, %s1236_s6  }
  0x2a   : > { %s1087_s14 = scalar_lea.hbm %s1577_s3, 4096 }
  0x2b   : > { %p1088_p1 = scmp.ne.s32.totalorder %s1577_s3, %s1087_s14  ;;  %p1094_p10 = scmp.lt.u32.totalorder %s1087_s14, %s1577_s3 }
  0x2d   : > { %p1090_p4 = pnand %p1088_p1, %p1061_p13 }
  0x2f   : > { %p1091_p6 = pneg %p1090_p4 }
  0x31   : > { %p1096_p3 = pnand %p1094_p10, %p1091_p6 }
  0x33   : > { %1099 = shalt.err (!%p1096_p3)
}
  0x34   : > { %s1100_s7 = scalar_lea.vmem %s1343_s10, 4096  ;;  %p1108_p12 = scmp.lt.s32.totalorder %s1343_s10, %s1343_s10 }
  0x35   : > { %p1101_p5 = scmp.ne.s32.totalorder %s1343_s10, %s1100_s7  ;;  %p1109_p0 = scmp.lt.s32.totalorder %s1100_s7, %s1100_s7 }
  0x37   : > { %p1103_p7 = pnand %p1101_p5, %p1061_p13  ;;  %p1110_p1 = por %p1109_p0, %p1108_p12 }
  0x39   : > { %p1104_p9 = pneg %p1103_p7 }
  0x3b   : > { %p1111_p4 = pnand %p1110_p1, %p1104_p9 }
  0x3d   : > { %1114 = shalt.err (!%p1111_p4)
}
  0x3e   : > { %s1583_s25 = smov 128   ;;  %s1238_s6 = smov 8  }
  0x3f   : > { %987 = dma.hbm_to_vmem [thread:$0]  (!%p1339_p11), %s1577_s3, 4096, %s1343_s10, [#allocation6], %s1583_s25, %s1583_s25, %s1238_s6  }
  0x40   : > { %s34_s12 = sadd.s32 1, %s1227_s22  ;;  %s41_s13 = sadd.s32 1, %s1219_s20 }
  0x41   : > { %p36_p13 = scmp.ge.s32.totalorder %s34_s12, 2  ;;  %p48_p6 = scmp.ne.s32.totalorder %s1219_s20, %s1215_s19 }
  0x42   : > { %p49_p10 = scmp.eq.s32.totalorder %s1231_s23, 0  ;;  %p998_p3 = scmp.lt.s32.totalorder %s1231_s23, 2 }
  0x43   : > { %s1605_s12 = smov (%p36_p13, %s34_s12), 0  ;;  %p1410_p7 = por %p1312_p2, %p48_p6 }
  0x44   : > { %p50_p5 = por %p49_p10, %p48_p6  ;;  %s38_s14 = ssub.s32 %s1227_s22, %s1605_s12 }
  0x45   : > { %s1591_s8 = scalar_select %p1410_p7, 1, 0 }
  0x46   : > { %s246_s15 = sand.u32 1, %s1219_s20   ;;  %p39_p9 = scmp.eq.s32.totalorder %s38_s14, 0 }
  0x47   : > { %s833_s10 = sshll.u32 %s246_s15, 6  ;;  %s847_s16 = sshll.u32 %s1227_s22, 10 }
  0x48   : > { %s1419_s17 = scalar_select %p39_p9, %s1219_s20, %s41_s13  }
  0x49   : > { %s1424_s9 = scalar_lea.hbm %s1574_s0, %s847_s16  ;;  %s250_s27 = scalar_lea.vmem [#allocation2], %s833_s10 }
  0x4a   : > { %s257_s11 = sshll.u32 %s250_s27, 4  ;;  %p1428_p2 = pnand %p998_p3, %p50_p5  ;;  %s1432_s11 = int_to_ptr.vmem [resolvable:$true] %s257_s11 }
  0x4b   : > { %s1434_s13 = scalar_lea.sflag [#allocation3], %s246_s15  ;;  %s1115_s14 = scalar_lea.hbm %s1424_s9, 1024 }
  0x4c   : > { %p1116_p11 = scmp.ne.s32.totalorder %s1424_s9, %s1115_s14  ;;  %p1117_p12 = pneg %p1428_p2 }
  0x4d   : > { %s1120_s24 = scalar_lea.hbm %s1574_s0, 2048  ;;  %p1121_p4 = scmp.lt.u32.totalorder %s1424_s9, %s1574_s0 }
  0x4e   : > { %p1118_p0 = pnand %p1117_p12, %p1116_p11  ;;  %p1122_p13 = scmp.lt.u32.totalorder %s1120_s24, %s1115_s14 }
  0x4f   : > { %p1124_p10 = scmp.lt.u32.totalorder %s1115_s14, %s1424_s9 }
  0x50   : > { %p1119_p1 = pneg %p1118_p0  ;;  %p1123_p6 = por %p1122_p13, %p1121_p4 }
  0x52   : > { %p1125_p3 = por %p1124_p10, %p1123_p6 }
  0x54   : > { %p1126_p5 = pnand %p1125_p3, %p1119_p1 }
  0x56   : > { %1129 = shalt.err (!%p1126_p5)
}
  0x57   : > { %s1130_s15 = scalar_lea.vmem %s1432_s11, 1024  ;;  %s1239_s10 = smov [#allocation2]  }
  0x58   : > { %p1131_p9 = scmp.ne.s32.totalorder %s1432_s11, %s1130_s15  ;;  %s1135_s16 = sshll.u32 %s1239_s10, 4  ;;  %s1136_s16 = int_to_ptr.vmem [resolvable:$false] %s1135_s16 }
  0x59   : > { %s1137_s7 = scalar_lea.vmem %s1136_s16, 2048  ;;  %p1138_p7 = scmp.lt.s32.totalorder %s1432_s11, %s1136_s16 }
  0x5a   : > { %p1133_p11 = pnand %p1131_p9, %p1117_p12  ;;  %p1139_p4 = scmp.lt.s32.totalorder %s1137_s7, %s1130_s15 }
  0x5c   : > { %p1134_p0 = pneg %p1133_p11  ;;  %p1140_p13 = por %p1139_p4, %p1138_p7 }
  0x5e   : > { %p1141_p6 = pnand %p1140_p13, %p1134_p0 }
  0x60   : > { %1144 = shalt.err (!%p1141_p6)
}
  0x61   : > { %s1593_s14 = smov 128   ;;  %269 = sbr.rel (%p1328_p8) target bundleno = 621 (0x26d), region = 40 }
  0x62   : > { %991 = dma.hbm_to_vmem [thread:$0]  (!%p1428_p2), %s1424_s9, 1024, %s1432_s11, %s1434_s13, %s1593_s14, %s1593_s14, %s1238_s6  }
  0x63   : > { %s1468_s24 = sand.u32 (!%p1328_p8), 1, %s1215_s19   ;;  %p1594_p7 = scmp.ne.s32.totalorder (!%p1328_p8), %s1587_s28, 0 }
  0x64   : > { %s837_s27 = sshll.u32 (!%p1328_p8), %s1468_s24, 6  ;;  %s272_s15 = scalar_lea.sflag (!%p1328_p8), [#allocation3], %s1468_s24 }
  0x65   : > { %s1474_s25 = scalar_lea.vmem (!%p1328_p8), [#allocation2], %s837_s27 }
  0x68   : > { %1198 = dma.done.wait (%p1594_p7), %s272_s15, 1024  }
  0x69   : > { %1200 = vsyncadd (%p1594_p7), %s272_s15, 4294966272  ;;  %p1595_p2 = scmp.ne.s32.totalorder %s1585_s26, 0 }
  0x6b   : > { %1202 = dma.done.wait (%p1595_p2), [#allocation6], 8192  }
  0x6c   : > { %1204 = vsyncadd (%p1595_p2), [#allocation6], 4294959104  ;;  %v1240_v0 = vmov 0.0   ;;  %v332_v1 = vld [vmem:[#allocation5 + $0x8] sm:$0xff]  ;;  %v334_v2 = vld [vmem:[#allocation5 + $0x18] sm:$0xff]  ;;  %s1508_s9 = scalar_lea.vmem [#allocation8], %s837_s27 }
  0x6d   : > { %439 = vmatprep.mubr.f32.mxu0 %v1240_v0  ;;  %v331_v3 = vld [vmem:[#allocation5] sm:$0xff]  ;;  %v905_v4 = vpack.c.bf16 %v334_v2, %v332_v1  ;;  %v333_v5 = vld [vmem:[#allocation5 + $0x10] sm:$0xff]  ;;  %v336_v6 = vld [vmem:[#allocation5 + $0x28] sm:$0xff]  ;;  %s710_s11 = sshll.u32 %s1508_s9, 4  ;;  %s848_s13 = sshll.u32 %s1223_s21, 10  ;;  %s1518_s11 = int_to_ptr.vmem [resolvable:$true] %s710_s11 }
  0x6e   : > { %v338_v7 = vld [vmem:[#allocation5 + $0x38] sm:$0xff]  ;;  %v907_v8 = vpack.c.bf16 %v333_v5, %v331_v3  ;;  %v335_v10 = vld [vmem:[#allocation5 + $0x20] sm:$0xff]  ;;  %v337_v11 = vld [vmem:[#allocation5 + $0x30] sm:$0xff]  ;;  %s1524_s7 = scalar_lea.hbm %s1579_s5, %s848_s13  ;;  %s697_s14 = scalar_lea.sflag [#allocation4], %s1468_s24 }
  0x6f   : > { %v909_v9 = vpack.c.bf16 %v338_v7, %v336_v6  ;;  %v340_v12 = vld [vmem:[#allocation5 + $0x48] sm:$0xff]  ;;  %906 = vmatprep.subr.bf16.mxu0 %v905_v4  ;;  %v342_v13 = vld [vmem:[#allocation5 + $0x58] sm:$0xff]  ;;  %v911_v14 = vpack.c.bf16 %v337_v11, %v335_v10  ;;  %v339_v16 = vld [vmem:[#allocation5 + $0x40] sm:$0xff]  ;;  %s1145_s27 = scalar_lea.vmem %s1518_s11, 1024  ;;  %p1596_p12 = scmp.ne.s32.totalorder %s1591_s8, 0 }
  0x70   : > { %908 = vmatpush1.bf16.msra.mxu0 %v907_v8  ;;  %v913_v15 = vpack.c.bf16 %v342_v13, %v340_v12  ;;  %v341_v17 = vld [vmem:[#allocation5 + $0x50] sm:$0xff]  ;;  %v344_v18 = vld [vmem:[#allocation5 + $0x68] sm:$0xff]  ;;  %v346_v19 = vld [vmem:[#allocation5 + $0x78] sm:$0xff]  ;;  %p1146_p8 = scmp.ne.s32.totalorder %s1518_s11, %s1145_s27  ;;  %s1241_s21 = smov [#allocation8]  }
  0x71   : > { %910 = vmatprep.subr.bf16.mxu0 %v909_v9  ;;  %v915_v20 = vpack.c.bf16 %v341_v17, %v339_v16  ;;  %v917_v21 = vpack.c.bf16 %v346_v19, %v344_v18  ;;  %v343_v22 = vld [vmem:[#allocation5 + $0x60] sm:$0xff]  ;;  %v345_v23 = vld [vmem:[#allocation5 + $0x70] sm:$0xff]  ;;  %v348_v24 = vld [vmem:[#allocation5 + $0x88] sm:$0xff]  ;;  %s1149_s15 = sshll.u32 %s1241_s21, 4  ;;  %s1150_s15 = int_to_ptr.vmem [resolvable:$false] %s1149_s15 }
  0x72   : > { %v350_v25 = vld [vmem:[#allocation5 + $0x98] sm:$0xff]  ;;  %v919_v26 = vpack.c.bf16 %v345_v23, %v343_v22  ;;  %v347_v27 = vld [vmem:[#allocation5 + $0x80] sm:$0xff]  ;;  %v349_v28 = vld [vmem:[#allocation5 + $0x90] sm:$0xff]  ;;  %p1147_p1 = pnand %p1146_p8, %p1596_p12  ;;  %p1152_p3 = scmp.lt.s32.totalorder %s1518_s11, %s1150_s15 }
  0x73   : > { %v352_v29 = vld [vmem:[#allocation5 + $0xa8] sm:$0xff]  ;;  %v921_v30 = vpack.c.bf16 %v350_v25, %v348_v24  ;;  %v354_v31 = vld [vmem:[#allocation5 + $0xb8] sm:$0xff]  ;;  %v520_v32 = vld [vmem:[#allocation7 + $0x80] sm:$0xff]  ;;  %v923_v42 = vpack.c.bf16 %v349_v28, %v347_v27 }
  0x74   : > { %912 = vmatpush1.bf16.msra.mxu0 %v911_v14  ;;  %v521_v33 = vld [vmem:[#allocation7 + $0x88] sm:$0xff]  ;;  %v504_v35 = vld [vmem:[#allocation7] sm:$0xff]  ;;  %v522_v37 = vld [vmem:[#allocation7 + $0x90] sm:$0xff]  ;;  %v925_v46 = vpack.c.bf16 %v354_v31, %v352_v29  ;;  %p1148_p10 = pneg %p1147_p1 }
  0x75   : > { %914 = vmatprep.subr.bf16.mxu0 %v913_v15  ;;  %v937_v34 = vpack.c.bf16 %v521_v33, %v520_v32  ;;  %v505_v36 = vld [vmem:[#allocation7 + $0x8] sm:$0xff]  ;;  %v523_v39 = vld [vmem:[#allocation7 + $0x98] sm:$0xff]  ;;  %v506_v40 = vld [vmem:[#allocation7 + $0x10] sm:$0xff] }
  0x76   : > { %v939_v38 = vpack.c.bf16 %v505_v36, %v504_v35  ;;  %v507_v41 = vld [vmem:[#allocation7 + $0x18] sm:$0xff]  ;;  %v941_v43 = vpack.c.bf16 %v523_v39, %v522_v37  ;;  %v524_v44 = vld [vmem:[#allocation7 + $0xa0] sm:$0xff]  ;;  %v525_v45 = vld [vmem:[#allocation7 + $0xa8] sm:$0xff] }
  0x77   : > { %938 = vmatprep.subr.bf16.mxu1 %v937_v34  ;;  %v351_v47 = vld [vmem:[#allocation5 + $0xa0] sm:$0xff]  ;;  %v353_v48 = vld [vmem:[#allocation5 + $0xb0] sm:$0xff]  ;;  %v356_v49 = vld [vmem:[#allocation5 + $0xc8] sm:$0xff]  ;;  %v943_v50 = vpack.c.bf16 %v507_v41, %v506_v40  ;;  %v945_v52 = vpack.c.bf16 %v525_v45, %v524_v44 }
  0x78   : > { %916 = vmatpush1.bf16.msra.mxu0 %v915_v20  ;;  %940 = vmatpush3.bf16.msra.mxu1 %v939_v38  ;;  %v358_v51 = vld [vmem:[#allocation5 + $0xd8] sm:$0xff]  ;;  %v508_v53 = vld [vmem:[#allocation7 + $0x20] sm:$0xff]  ;;  %v509_v54 = vld [vmem:[#allocation7 + $0x28] sm:$0xff]  ;;  %v927_v57 = vpack.c.bf16 %v353_v48, %v351_v47 }
  0x79   : > { %918 = vmatprep.subr.bf16.mxu0 %v917_v21  ;;  %942 = vmatprep.subr.bf16.mxu1 %v941_v43  ;;  %v526_v55 = vld [vmem:[#allocation7 + $0xb0] sm:$0xff]  ;;  %v527_v56 = vld [vmem:[#allocation7 + $0xb8] sm:$0xff]  ;;  %v929_v58 = vpack.c.bf16 %v358_v51, %v356_v49  ;;  %v355_v59 = vld [vmem:[#allocation5 + $0xc0] sm:$0xff]  ;;  %v947_v62 = vpack.c.bf16 %v509_v54, %v508_v53 }
  0x7a   : > { %v357_v60 = vld [vmem:[#allocation5 + $0xd0] sm:$0xff]  ;;  %v360_v61 = vld [vmem:[#allocation5 + $0xe8] sm:$0xff]  ;;  %v362_v63 = vld [vmem:[#allocation5 + $0xf8] sm:$0xff]  ;;  %v949_v1 = vpack.c.bf16 %v527_v56, %v526_v55 }
  0x7b   : > { %v510_v2 = vld [vmem:[#allocation7 + $0x30] sm:$0xff]  ;;  %v511_v3 = vld [vmem:[#allocation7 + $0x38] sm:$0xff]  ;;  %v528_v4 = vld [vmem:[#allocation7 + $0xc0] sm:$0xff]  ;;  %v931_v6 = vpack.c.bf16 %v357_v60, %v355_v59  ;;  %v933_v7 = vpack.c.bf16 %v362_v63, %v360_v61 }
  0x7c   : > { %920 = vmatpush1.bf16.msra.mxu0 %v919_v26  ;;  %944 = vmatpush3.bf16.msra.mxu1 %v943_v50  ;;  %v529_v5 = vld [vmem:[#allocation7 + $0xc8] sm:$0xff]  ;;  %v359_v8 = vld [vmem:[#allocation5 + $0xe0] sm:$0xff]  ;;  %v361_v9 = vld [vmem:[#allocation5 + $0xf0] sm:$0xff]  ;;  %v951_v10 = vpack.c.bf16 %v511_v3, %v510_v2 }
  0x7d   : > { %922 = vmatprep.subr.bf16.mxu0 %v921_v30  ;;  %946 = vmatprep.subr.bf16.mxu1 %v945_v52  ;;  %v953_v11 = vpack.c.bf16 %v529_v5, %v528_v4  ;;  %v512_v12 = vld [vmem:[#allocation7 + $0x40] sm:$0xff]  ;;  %v513_v13 = vld [vmem:[#allocation7 + $0x48] sm:$0xff]  ;;  %v530_v14 = vld [vmem:[#allocation7 + $0xd0] sm:$0xff]  ;;  %v935_v16 = vpack.c.bf16 %v361_v9, %v359_v8 }
  0x7e   : > { %v531_v15 = vld [vmem:[#allocation7 + $0xd8] sm:$0xff]  ;;  %v955_v17 = vpack.c.bf16 %v513_v13, %v512_v12  ;;  %v514_v19 = vld [vmem:[#allocation7 + $0x50] sm:$0xff]  ;;  %v532_v21 = vld [vmem:[#allocation7 + $0xe0] sm:$0xff] }
  0x7f   : > { %v957_v18 = vpack.c.bf16 %v531_v15, %v530_v14  ;;  %v515_v20 = vld [vmem:[#allocation7 + $0x58] sm:$0xff]  ;;  %v533_v22 = vld [vmem:[#allocation7 + $0xe8] sm:$0xff]  ;;  %v323_v23 = vld [vmem:[%s1474_s25] sm:$0xff] }
  0x80   : > { %924 = vmatpush1.bf16.msra.mxu0 %v923_v42  ;;  %948 = vmatpush3.bf16.msra.mxu1 %v947_v62  ;;  %v959_v24 = vpack.c.bf16 %v515_v20, %v514_v19  ;;  %v961_v25 = vpack.c.bf16 %v533_v22, %v532_v21  ;;  %v324_v26 = vld [vmem:[%s1474_s25 + $0x8] sm:$0xff]  ;;  %v325_v27 = vld [vmem:[%s1474_s25 + $0x10] sm:$0xff]  ;;  %v326_v28 = vld [vmem:[%s1474_s25 + $0x18] sm:$0xff]  ;;  %v365_v42 = vlaneseq }
  0x81   : > { %926 = vmatprep.subr.bf16.mxu0 %v925_v46  ;;  %950 = vmatprep.subr.bf16.mxu1 %v949_v1  ;;  %v327_v29 = vld [vmem:[%s1474_s25 + $0x20] sm:$0xff]  ;;  %v328_v30 = vld [vmem:[%s1474_s25 + $0x28] sm:$0xff]  ;;  %v329_v31 = vld [vmem:[%s1474_s25 + $0x30] sm:$0xff] }
  0x82   : > { %v330_v32 = vld [vmem:[%s1474_s25 + $0x38] sm:$0xff]  ;;  %v516_v33 = vld [vmem:[#allocation7 + $0x60] sm:$0xff]  ;;  %v517_v34 = vld [vmem:[#allocation7 + $0x68] sm:$0xff]  ;;  %v366_v43 = vshrl.u32 %v365_v42, 7  ;;  %s1151_s25 = scalar_lea.vmem %s1150_s15, 2048 }
  0x83   : > { %v963_v35 = vpack.c.bf16 %v517_v34, %v516_v33  ;;  %v534_v36 = vld [vmem:[#allocation7 + $0xf0] sm:$0xff]  ;;  %v535_v37 = vld [vmem:[#allocation7 + $0xf8] sm:$0xff]  ;;  %p1153_p5 = scmp.lt.s32.totalorder %s1151_s25, %s1145_s27 }
  0x84   : > { %928 = vmatpush1.bf16.msra.mxu0 %v927_v57  ;;  %952 = vmatpush3.bf16.msra.mxu1 %v951_v10  ;;  %v965_v38 = vpack.c.bf16 %v535_v37, %v534_v36  ;;  %v518_v39 = vld [vmem:[#allocation7 + $0x70] sm:$0xff]  ;;  %v519_v40 = vld [vmem:[#allocation7 + $0x78] sm:$0xff]  ;;  %v367_v44 = vsub.s32 0, %v366_v43  ;;  %v371_v45 = vsub.s32 1, %v366_v43 }
  0x85   : > { %930 = vmatprep.subr.bf16.mxu0 %v929_v58  ;;  %954 = vmatprep.subr.bf16.mxu1 %v953_v11  ;;  %v967_v41 = vpack.c.bf16 %v519_v40, %v518_v39  ;;  %p1154_p9 = por %p1153_p5, %p1152_p3 }
  0x87   : > { %p1155_p11 = pnand %p1154_p9, %p1148_p10 }
  0x88   : > { %932 = vmatpush1.bf16.msra.mxu0 %v931_v6  ;;  %956 = vmatpush3.bf16.msra.mxu1 %v955_v17 }
  0x89   : > { %934 = vmatprep.subr.bf16.mxu0 %v933_v7  ;;  %958 = vmatprep.subr.bf16.mxu1 %v957_v18 }
  0x8c   : > { %936 = vmatpush1.bf16.msra.mxu0 %v935_v16  ;;  %960 = vmatpush3.bf16.msra.mxu1 %v959_v24 }
  0x8d   : > { %962 = vmatprep.subr.bf16.mxu1 %v961_v25 }
  0x8f   : > { %440 = vmatmul.mubr.f32.vlgmr.msra.gmra.mrb[0].mxu0 %v323_v23 }
  0x90   : > { %445 = vmatprep.mubr.f32.mxu0 %v1240_v0  ;;  %964 = vmatpush3.bf16.msra.mxu1 %v963_v35  ;;  %v841_v35 = vld [vmem:[%s1578_s4] ss:$0 sm:$0xff] }
  0x91   : > { %966 = vmatprep.subr.bf16.mxu1 %v965_v38 }
  0x93   : > { %446 = vmatmul.mubr.f32.gmra.mrb[2].mxu0 %v324_v26 }
  0x94   : > { %451 = vmatprep.mubr.f32.mxu0 %v1240_v0  ;;  %968 = vmatpush3.bf16.msra.mxu1 %v967_v41 }
  0x97   : > { %452 = vmatmul.mubr.f32.gmra.mrb[4].mxu0 %v325_v27 }
  0x98   : > { %457 = vmatprep.mubr.f32.mxu0 %v1240_v0 }
  0x9b   : > { %458 = vmatmul.mubr.f32.gmra.mrb[6].mxu0 %v326_v28 }
  0x9c   : > { %463 = vmatprep.mubr.f32.mxu0 %v1240_v0 }
  0x9f   : > { %464 = vmatmul.mubr.f32.gmra.mrb[8].mxu0 %v327_v29 }
  0xa0   : > { %469 = vmatprep.mubr.f32.mxu0 %v1240_v0 }
  0xa3   : > { %470 = vmatmul.mubr.f32.gmra.mrb[10].mxu0 %v328_v30 }
  0xa4   : > { %475 = vmatprep.mubr.f32.mxu0 %v1240_v0 }
  0xa7   : > { %476 = vmatmul.mubr.f32.gmra.mrb[12].mxu0 %v329_v31 }
  0xa8   : > { %481 = vmatprep.mubr.f32.mxu0 %v1240_v0  ;;  %v363_v0 = vld [vmem:[%s1576_s2] sm:$0x3] }
  0xa9   : > { %v368_v46 = vrot.slane %v363_v0, %v367_v44  ;;  %v372_v47 = vrot.slane %v363_v0, %v371_v45 }
  0xab   : > { %482 = vmatmul.mubr.f32.gmra.mrb[14].mxu0 %v330_v32 }
 0x162   : > { %v441_v48 = vpop.f32.mrb[0].mxu0 }
 0x163   : > { %v442_v49 = vadd.f32 %v441_v48, %v368_v46  ;;  %v443_v50 = vpop.f32.mrb[1].mxu0 }
 0x164   : > { %v444_v51 = vadd.f32 %v443_v50, %v372_v47 }
 0x165   : > { %v488_v54 = vmax.f32 %v442_v49, 0.0 }
 0x166   : > { %v447_v52 = vpop.f32.mrb[2].mxu0  ;;  %v489_v53 = vmax.f32 %v444_v51, 0.0 }
 0x167   : > { %v448_v55 = vadd.f32 %v447_v52, %v368_v46  ;;  %v449_v56 = vpop.f32.mrb[3].mxu0 }
 0x168   : > { %v450_v57 = vadd.f32 %v449_v56, %v372_v47  ;;  %600 = vmatprep.mubr.f32.mxu1 %v489_v53 }
 0x169   : > { %601 = vmatmul.mubr.f32.vlgmr.msra.gmra.mrb[0].mxu1 %v488_v54  ;;  %v490_v60 = vmax.f32 %v448_v55, 0.0 }
 0x16a   : > { %v491_v58 = vmax.f32 %v450_v57, 0.0  ;;  %v453_v59 = vpop.f32.mrb[4].mxu0 }
 0x16b   : > { %v454_v61 = vadd.f32 %v453_v59, %v368_v46  ;;  %v455_v62 = vpop.f32.mrb[5].mxu0 }
 0x16c   : > { %v456_v63 = vadd.f32 %v455_v62, %v372_v47  ;;  %605 = vmatprep.mubr.f32.mxu1 %v491_v58 }
 0x16d   : > { %606 = vmatmul.mubr.f32.gmra.mrb[2].mxu1 %v490_v60  ;;  %v492_v3 = vmax.f32 %v454_v61, 0.0 }
 0x16e   : > { %v493_v1 = vmax.f32 %v456_v63, 0.0  ;;  %v459_v2 = vpop.f32.mrb[6].mxu0 }
 0x16f   : > { %v460_v4 = vadd.f32 %v459_v2, %v368_v46  ;;  %v461_v5 = vpop.f32.mrb[7].mxu0 }
 0x170   : > { %v462_v6 = vadd.f32 %v461_v5, %v372_v47  ;;  %610 = vmatprep.mubr.f32.mxu1 %v493_v1 }
 0x171   : > { %611 = vmatmul.mubr.f32.gmra.mrb[4].mxu1 %v492_v3  ;;  %v494_v9 = vmax.f32 %v460_v4, 0.0 }
 0x172   : > { %v495_v7 = vmax.f32 %v462_v6, 0.0  ;;  %v465_v8 = vpop.f32.mrb[8].mxu0 }
 0x173   : > { %v466_v10 = vadd.f32 %v465_v8, %v368_v46  ;;  %v467_v11 = vpop.f32.mrb[9].mxu0 }
 0x174   : > { %v468_v12 = vadd.f32 %v467_v11, %v372_v47  ;;  %615 = vmatprep.mubr.f32.mxu1 %v495_v7 }
 0x175   : > { %616 = vmatmul.mubr.f32.gmra.mrb[6].mxu1 %v494_v9  ;;  %v496_v15 = vmax.f32 %v466_v10, 0.0 }
 0x176   : > { %v497_v13 = vmax.f32 %v468_v12, 0.0  ;;  %v471_v14 = vpop.f32.mrb[10].mxu0 }
 0x177   : > { %v472_v16 = vadd.f32 %v471_v14, %v368_v46  ;;  %v473_v17 = vpop.f32.mrb[11].mxu0 }
 0x178   : > { %v474_v18 = vadd.f32 %v473_v17, %v372_v47  ;;  %620 = vmatprep.mubr.f32.mxu1 %v497_v13 }
 0x179   : > { %621 = vmatmul.mubr.f32.gmra.mrb[8].mxu1 %v496_v15  ;;  %v498_v21 = vmax.f32 %v472_v16, 0.0 }
 0x17a   : > { %v499_v19 = vmax.f32 %v474_v18, 0.0  ;;  %v477_v20 = vpop.f32.mrb[12].mxu0 }
 0x17b   : > { %v478_v22 = vadd.f32 %v477_v20, %v368_v46  ;;  %v479_v23 = vpop.f32.mrb[13].mxu0 }
 0x17c   : > { %v480_v24 = vadd.f32 %v479_v23, %v372_v47  ;;  %625 = vmatprep.mubr.f32.mxu1 %v499_v19 }
 0x17d   : > { %626 = vmatmul.mubr.f32.gmra.mrb[10].mxu1 %v498_v21  ;;  %v500_v27 = vmax.f32 %v478_v22, 0.0 }
 0x17e   : > { %v501_v25 = vmax.f32 %v480_v24, 0.0  ;;  %v483_v26 = vpop.f32.mrb[14].mxu0 }
 0x17f   : > { %v484_v28 = vadd.f32 %v483_v26, %v368_v46  ;;  %v485_v29 = vpop.f32.mrb[15].mxu0 }
 0x180   : > { %v486_v30 = vadd.f32 %v485_v29, %v372_v47  ;;  %630 = vmatprep.mubr.f32.mxu1 %v501_v25 }
 0x181   : > { %631 = vmatmul.mubr.f32.gmra.mrb[12].mxu1 %v500_v27  ;;  %v502_v32 = vmax.f32 %v484_v28, 0.0 }
 0x182   : > { %v503_v31 = vmax.f32 %v486_v30, 0.0 }
 0x184   : > { %635 = vmatprep.mubr.f32.mxu1 %v503_v31 }
 0x185   : > { %636 = vmatmul.mubr.f32.gmra.mrb[14].mxu1 %v502_v32 }
 0x23c   : > { %v881_v33 = vpop.f32.mrb[0].mxu1 }
 0x23d   : > { %v882_v34 = vpop.f32.mrb[1].mxu1 }
 0x23e   : > { %v883_v36 = vadd.f32 %v882_v34, %v881_v33 }
 0x240   : > { %v652_v37 = vadd.f32 %v883_v36, %v841_v35  ;;  %v884_v38 = vpop.f32.mrb[2].mxu1 }
 0x241   : > { %v885_v39 = vpop.f32.mrb[3].mxu1 }
 0x242   : > { %660 = vst [vmem:[%s1508_s9] sm:$0xff] %v652_v37  ;;  %v886_v40 = vadd.f32 %v885_v39, %v884_v38 }
 0x244   : > { %v653_v41 = vadd.f32 %v886_v40, %v841_v35  ;;  %v887_v42 = vpop.f32.mrb[4].mxu1 }
 0x245   : > { %v888_v43 = vpop.f32.mrb[5].mxu1 }
 0x246   : > { %661 = vst [vmem:[%s1508_s9 + $0x8] sm:$0xff] %v653_v41  ;;  %v889_v44 = vadd.f32 %v888_v43, %v887_v42 }
 0x248   : > { %v654_v0 = vadd.f32 %v889_v44, %v841_v35  ;;  %v890_v45 = vpop.f32.mrb[6].mxu1 }
 0x249   : > { %v891_v46 = vpop.f32.mrb[7].mxu1 }
 0x24a   : > { %662 = vst [vmem:[%s1508_s9 + $0x10] sm:$0xff] %v654_v0  ;;  %v892_v47 = vadd.f32 %v891_v46, %v890_v45 }
 0x24c   : > { %v655_v48 = vadd.f32 %v892_v47, %v841_v35  ;;  %v893_v49 = vpop.f32.mrb[8].mxu1 }
 0x24d   : > { %v894_v50 = vpop.f32.mrb[9].mxu1 }
 0x24e   : > { %663 = vst [vmem:[%s1508_s9 + $0x18] sm:$0xff] %v655_v48  ;;  %v895_v51 = vadd.f32 %v894_v50, %v893_v49 }
 0x250   : > { %v656_v52 = vadd.f32 %v895_v51, %v841_v35  ;;  %v896_v53 = vpop.f32.mrb[10].mxu1 }
 0x251   : > { %v897_v54 = vpop.f32.mrb[11].mxu1 }
 0x252   : > { %664 = vst [vmem:[%s1508_s9 + $0x20] sm:$0xff] %v656_v52  ;;  %v898_v55 = vadd.f32 %v897_v54, %v896_v53 }
 0x254   : > { %v657_v56 = vadd.f32 %v898_v55, %v841_v35  ;;  %v899_v57 = vpop.f32.mrb[12].mxu1 }
 0x255   : > { %v900_v58 = vpop.f32.mrb[13].mxu1 }
 0x256   : > { %665 = vst [vmem:[%s1508_s9 + $0x28] sm:$0xff] %v657_v56  ;;  %v901_v59 = vadd.f32 %v900_v58, %v899_v57 }
 0x258   : > { %v658_v60 = vadd.f32 %v901_v59, %v841_v35  ;;  %v902_v61 = vpop.f32.mrb[14].mxu1 }
 0x259   : > { %v903_v62 = vpop.f32.mrb[15].mxu1 }
 0x25a   : > { %666 = vst [vmem:[%s1508_s9 + $0x30] sm:$0xff] %v658_v60  ;;  %v904_v63 = vadd.f32 %v903_v62, %v902_v61 }
 0x25c   : > { %v659_v1 = vadd.f32 %v904_v63, %v841_v35 }
 0x25e   : > { %667 = vst [vmem:[%s1508_s9 + $0x38] sm:$0xff] %v659_v1 }
 0x25f   : > { %1158 = shalt.err (!%p1155_p11)
}
 0x260   : > { %s1159_s26 = scalar_lea.hbm %s1524_s7, 1024  ;;  %s1163_s6 = scalar_lea.hbm %s1579_s5, 2048 }
 0x261   : > { %p1160_p0 = scmp.ne.s32.totalorder %s1524_s7, %s1159_s26  ;;  %p1164_p6 = scmp.lt.u32.totalorder %s1524_s7, %s1579_s5 }
 0x262   : > { %p1165_p7 = scmp.lt.u32.totalorder %s1163_s6, %s1159_s26  ;;  %p1167_p8 = scmp.lt.u32.totalorder %s1159_s26, %s1524_s7 }
 0x263   : > { %p1161_p4 = pnand %p1160_p0, %p1596_p12 }
 0x264   : > { %p1166_p2 = por %p1165_p7, %p1164_p6 }
 0x265   : > { %p1162_p13 = pneg %p1161_p4 }
 0x266   : > { %p1168_p1 = por %p1167_p8, %p1166_p2 }
 0x268   : > { %p1169_p10 = pnand %p1168_p1, %p1162_p13 }
 0x26a   : > { %1172 = shalt.err (!%p1169_p10)
}
 0x26b   : > { %s1242_s10 = smov 128   ;;  %s1243_s16 = smov 8  }
 0x26c   : > { %979 = dma.vmem_to_hbm [thread:$0]  (%p1596_p12), %s1518_s11, 1024, %s1524_s7, %s697_s14, %s1242_s10, %s1242_s10, %s1243_s16  }
 0x26d PF: > { %s725_s27 = sand.u32 1, %s1211_s18   ;;  %p1597_p3 = scmp.ne.s32.totalorder %s1588_s29, 0 }
 0x26e   : > { %p1598_p5 = scmp.ge.s32.totalorder %s1231_s23, 2  ;;  %s726_s21 = scalar_lea.sflag [#allocation4], %s725_s27 }
 0x270   : > { %p993_p9 = pnand %p1598_p5, %p1597_p3 }
 0x272   : > { %1206 = dma.done.wait (!%p993_p9), %s726_s21, 1024  }
 0x273   : > { %1208 = vsyncadd (!%p993_p9), %s726_s21, 4294966272  ;;  %s22_s23 = sadd.s32 1, %s1231_s23   ;;  %s1599_s18 = smov %s1215_s19 }
 0x274   : > { %p19_p11 = scmp.ge.s32.totalorder %s22_s23, 4   ;;  %s1600_s19 = smov %s1219_s20 }
 0x275   : > { %s1601_s20 = smov %s1419_s17  ;;  %s1602_s21 = smov %s1227_s22 }
 0x276   : > { %s1603_s22 = smov %s1605_s12  ;;  %21 = sbr.rel (!%p19_p11) target bundleno = 7 (0x7), region = 106 }
 0x27d   :  { %731 = vsyncpa [#allocation3], 1 }
 0x27e   :  { %733 = vsyncpa [#allocation3 + $0x1], 1 }
 0x27f   :  { %734 = vsyncpa [#allocation6], 1 }
 0x280   :  { %735 = vsyncpa [#allocation4], 1 }
 0x281   :  { %737 = vsyncpa [#allocation4 + $0x1], 1 }

</bundles_post_ra>
